<compile_context>
chip_gen: v5e
topology: v5e:2x2
jax: 0.10.0
libtpu: 0.0.40
codegen_flags: <defaults>
</compile_context>

<pallas_src>
import functools

import jax
import jax.numpy as jnp
from jax.experimental import pallas as pl
from jax.experimental.pallas import tpu as pltpu


_BN_EPS = 1e-5
_NEG_INF_BIAS = -1e30


def _leaky_relu(x, slope=0.01):
    return jnp.where(x > 0, x, slope * x)


def _batch_norm(x, gamma, beta):
    # Training-mode BatchNorm1d: batch mean + biased batch variance.
    mean = jnp.mean(x, axis=0, keepdims=True)
    centered = x - mean
    var = jnp.mean(centered * centered, axis=0, keepdims=True)
    return centered * jax.lax.rsqrt(var + _BN_EPS) * gamma + beta


def _multi_critic_kernel(s_ref, oa_ref, act_ref,
                         gs_ref, bs_ref, goa_ref, boa_ref,
                         w1a_ref, w1b_ref, b1_ref,
                         w2a_ref, w2b_ref, b2_ref,
                         w3_ref, b3_ref,
                         w4_ref, b4_ref,
                         out_ref, *, log_prob: bool,
                         oa_width: int, act_width: int):
    s = s_ref[...].astype(jnp.float32)      # (B, n_agents * state_size)
    oa = oa_ref[...].astype(jnp.float32)    # (B, (n_agents - 1) * action_size)
    a = act_ref[...].astype(jnp.float32)    # (B, action_size)

    # ---- BatchNorm1d over the (virtually concatenated) input features ----
    xs = _batch_norm(s, gs_ref[...], bs_ref[...])
    xoa = _batch_norm(oa, goa_ref[...], boa_ref[...])

    # ---- fc1 + leaky_relu: state segment on the MXU, tiny K on the VPU ----
    h1 = jnp.dot(xs.astype(jnp.bfloat16), w1a_ref[...],
                 preferred_element_type=jnp.float32) + b1_ref[...]
    for j in range(oa_width):               # K = oa_width outer-product (VPU)
        h1 = h1 + xoa[:, j:j + 1] * w1b_ref[j:j + 1, :]
    h1 = _leaky_relu(h1)

    # ---- fc2 on concat([h1, actions]) + leaky_relu ----
    h2 = jnp.dot(h1.astype(jnp.bfloat16), w2a_ref[...],
                 preferred_element_type=jnp.float32) + b2_ref[...]
    for j in range(act_width):              # K = action_size outer-product (VPU)
        h2 = h2 + a[:, j:j + 1] * w2b_ref[j:j + 1, :]
    h2 = _leaky_relu(h2)

    # ---- fc3 + leaky_relu ----
    h3 = _leaky_relu(jnp.dot(h2.astype(jnp.bfloat16), w3_ref[...],
                             preferred_element_type=jnp.float32) + b3_ref[...])

    # ---- fc4: logits over the lane-padded atom axis ----
    # Padded columns carry zero weights and a -1e30 bias -> ~0 after softmax.
    logits = jnp.dot(h3.astype(jnp.bfloat16), w4_ref[...],
                     preferred_element_type=jnp.float32) + b4_ref[...]

    # ---- (log_)softmax over the lane-dense (128-wide) atom axis ----
    m = jnp.max(logits, axis=-1, keepdims=True)
    shifted = logits - m
    e = jnp.exp(shifted)
    denom = jnp.sum(e, axis=-1, keepdims=True)
    if log_prob:
        out = shifted - jnp.log(denom)
    else:
        out = e * pl.reciprocal(denom, approx=True)   # EUP slot, frees the VPU
    out_ref[...] = out.astype(out_ref.dtype)


def multi_critic_forward(params, states, actions, other_actions,
                         n_atoms=51, log_prob=False):
    """Pallas forward pass of MultiCritic. Returns (batch, n_atoms) (log-)probs."""
    batch = states.shape[0]
    s_width = states.shape[1]
    oa_width = other_actions.shape[1]
    act_width = actions.shape[1]
    atoms_padded = params["w4"].shape[1]

    inputs = (
        states, other_actions, actions,
        params["bn_gamma_s"], params["bn_beta_s"],
        params["bn_gamma_oa"], params["bn_beta_oa"],
        params["w1a"], params["w1b"], params["b1"],
        params["w2a"], params["w2b"], params["b2"],
        params["w3"], params["b3"],
        params["w4"], params["b4"],
    )

    # Advisory cost estimate so XLA can schedule the custom call sensibly.
    flops = int(2 * batch * (s_width * 256 + oa_width * 256 + 256 * 256
                             + act_width * 256 + 256 * 128
                             + 128 * atoms_padded))
    transcendentals = int(batch * (atoms_padded + 2) + s_width + oa_width)
    bytes_accessed = int(sum(int(x.size) * x.dtype.itemsize for x in inputs)
                         + batch * atoms_padded * 4)

    vmem = pl.BlockSpec(memory_space=pltpu.MemorySpace.VMEM)
    out = pl.pallas_call(
        functools.partial(_multi_critic_kernel, log_prob=log_prob,
                          oa_width=oa_width, act_width=act_width),
        out_shape=jax.ShapeDtypeStruct((batch, atoms_padded), jnp.float32),
        in_specs=[vmem] * len(inputs),
        out_specs=vmem,
        cost_estimate=pl.CostEstimate(flops=flops,
                                      transcendentals=transcendentals,
                                      bytes_accessed=bytes_accessed),
        compiler_params=pltpu.CompilerParams(),
    )(*inputs)
    return out[:, :n_atoms]


def init_params(key, state_size, action_size, n_agents, n_atoms=51,
                atoms_padded=128):
    """PyTorch-default Linear init (U(-1/sqrt(fan_in), +)), laid out for the kernel."""
    s_width = n_agents * state_size
    oa_width = (n_agents - 1) * action_size
    input_size = s_width + oa_width

    def linear(k, fan_in, fan_out):
        kw, kb = jax.random.split(k)
        bound = 1.0 / jnp.sqrt(jnp.float32(fan_in))
        w = jax.random.uniform(kw, (fan_in, fan_out), jnp.float32, -bound, bound)
        b = jax.random.uniform(kb, (1, fan_out), jnp.float32, -bound, bound)
        return w, b

    k1, k2, k3, k4 = jax.random.split(key, 4)
    w1, b1 = linear(k1, input_size, 256)
    w2, b2 = linear(k2, 256 + action_size, 256)
    w3, b3 = linear(k3, 256, 128)
    w4, b4 = linear(k4, 128, n_atoms)

    # Lane-pad the atom axis: zero weights + very negative bias on padded
    # columns so softmax assigns them ~0 probability.
    w4p = jnp.zeros((128, atoms_padded), jnp.float32).at[:, :n_atoms].set(w4)
    b4p = jnp.full((1, atoms_padded), _NEG_INF_BIAS,
                   jnp.float32).at[:, :n_atoms].set(b4)

    return {
        "bn_gamma_s": jnp.ones((1, s_width), jnp.float32),
        "bn_beta_s": jnp.zeros((1, s_width), jnp.float32),
        "bn_gamma_oa": jnp.ones((1, oa_width), jnp.float32),
        "bn_beta_oa": jnp.zeros((1, oa_width), jnp.float32),
        # Big matmul operands stored in bf16 (MXU); tiny-K weights & biases f32.
        "w1a": w1[:s_width, :].astype(jnp.bfloat16),
        "w1b": w1[s_width:, :],
        "b1": b1,
        "w2a": w2[:256, :].astype(jnp.bfloat16),
        "w2b": w2[256:, :],
        "b2": b2,
        "w3": w3.astype(jnp.bfloat16),
        "b3": b3,
        "w4": w4p.astype(jnp.bfloat16),
        "b4": b4p,
    }


def multi_critic_reference(params, states, actions, other_actions,
                           n_atoms=51, log_prob=False):
    """Pure-JAX f32 reference with identical weights (bf16 weights upcast)."""
    x = jnp.concatenate([states, other_actions], axis=-1)
    gamma = jnp.concatenate([params["bn_gamma_s"], params["bn_gamma_oa"]], axis=-1)
    beta = jnp.concatenate([params["bn_beta_s"], params["bn_beta_oa"]], axis=-1)
    mean = jnp.mean(x, axis=0, keepdims=True)
    var = jnp.mean((x - mean) ** 2, axis=0, keepdims=True)
    xn = (x - mean) / jnp.sqrt(var + _BN_EPS) * gamma + beta

    w1 = jnp.concatenate([params["w1a"].astype(jnp.float32), params["w1b"]], axis=0)
    h1 = jax.nn.leaky_relu(xn @ w1 + params["b1"], 0.01)
    w2 = jnp.concatenate([params["w2a"].astype(jnp.float32), params["w2b"]], axis=0)
    h2 = jax.nn.leaky_relu(
        jnp.concatenate([h1, actions], axis=-1) @ w2 + params["b2"], 0.01)
    h3 = jax.nn.leaky_relu(h2 @ params["w3"].astype(jnp.float32) + params["b3"], 0.01)
    logits = (h3 @ params["w4"].astype(jnp.float32) + params["b4"])[:, :n_atoms]
    if log_prob:
        return jax.nn.log_softmax(logits, axis=-1)
    return jax.nn.softmax(logits, axis=-1)


if __name__ == "__main__":
    # Tennis env shapes: 2 agents, 24-dim observations, 2-dim continuous actions.
    state_size, action_size, n_agents, n_atoms = 24, 2, 2, 51
    batch = 8

    key = jax.random.PRNGKey(0)
    kp, ks, ka, ko = jax.random.split(key, 4)
    params = init_params(kp, state_size, action_size, n_agents, n_atoms)

    states = jax.random.normal(ks, (batch, n_agents * state_size), jnp.float32)
    actions = jax.random.normal(ka, (batch, action_size), jnp.float32)
    other_actions = jax.random.normal(
        ko, (batch, (n_agents - 1) * action_size), jnp.float32)

    probs = jax.block_until_ready(
        multi_critic_forward(params, states, actions, other_actions,
                             n_atoms=n_atoms, log_prob=False))
    assert probs.shape == (batch, n_atoms)
    # Probabilities normalize (approx reciprocal -> slightly loose tolerance).
    assert jnp.allclose(jnp.sum(probs, axis=-1), 1.0, atol=5e-3)

    log_probs = jax.block_until_ready(
        multi_critic_forward(params, states, actions, other_actions,
                             n_atoms=n_atoms, log_prob=True))
    assert log_probs.shape == (batch, n_atoms)
    assert jnp.allclose(jnp.sum(jnp.exp(log_probs), axis=-1), 1.0, atol=5e-3)

    # Compare against a pure-JAX f32 reference (bf16 matmuls -> loose tolerance).
    ref_probs = multi_critic_reference(params, states, actions, other_actions,
                                       n_atoms=n_atoms, log_prob=False)
    assert jnp.allclose(probs, ref_probs, atol=5e-3), \
        float(jnp.max(jnp.abs(probs - ref_probs)))

    print("KERNEL_OK")
</pallas_src>

<mosaic_0001>
module attributes {stable_mosaic.version = 11 : i64} {
  func.func @_multi_critic_kernel(%arg0: memref<8x48xf32, #tpu.memory_space<vmem>>, %arg1: memref<8x2xf32, #tpu.memory_space<vmem>>, %arg2: memref<8x2xf32, #tpu.memory_space<vmem>>, %arg3: memref<1x48xf32, #tpu.memory_space<vmem>>, %arg4: memref<1x48xf32, #tpu.memory_space<vmem>>, %arg5: memref<1x2xf32, #tpu.memory_space<vmem>>, %arg6: memref<1x2xf32, #tpu.memory_space<vmem>>, %arg7: memref<48x256xbf16, #tpu.memory_space<vmem>>, %arg8: memref<2x256xf32, #tpu.memory_space<vmem>>, %arg9: memref<1x256xf32, #tpu.memory_space<vmem>>, %arg10: memref<256x256xbf16, #tpu.memory_space<vmem>>, %arg11: memref<2x256xf32, #tpu.memory_space<vmem>>, %arg12: memref<1x256xf32, #tpu.memory_space<vmem>>, %arg13: memref<256x128xbf16, #tpu.memory_space<vmem>>, %arg14: memref<1x128xf32, #tpu.memory_space<vmem>>, %arg15: memref<128x128xbf16, #tpu.memory_space<vmem>>, %arg16: memref<1x128xf32, #tpu.memory_space<vmem>>, %arg17: memref<8x128xf32, #tpu.memory_space<vmem>>) attributes {dimension_semantics = [], scalar_prefetch = 0 : i64, scratch_operands = 0 : i64, tpu.core_type = #tpu.core_type<tc>} {
    %c0 = arith.constant 0 : index
    %c0_0 = arith.constant 0 : index
    %0 = vector.load %arg0[%c0, %c0_0] : memref<8x48xf32, #tpu.memory_space<vmem>>, vector<8x48xf32>
    %c0_1 = arith.constant 0 : index
    %c0_2 = arith.constant 0 : index
    %1 = vector.load %arg1[%c0_1, %c0_2] : memref<8x2xf32, #tpu.memory_space<vmem>>, vector<8x2xf32>
    %c0_3 = arith.constant 0 : index
    %c0_4 = arith.constant 0 : index
    %2 = vector.load %arg2[%c0_3, %c0_4] : memref<8x2xf32, #tpu.memory_space<vmem>>, vector<8x2xf32>
    %c0_5 = arith.constant 0 : index
    %c0_6 = arith.constant 0 : index
    %3 = vector.load %arg3[%c0_5, %c0_6] : memref<1x48xf32, #tpu.memory_space<vmem>>, vector<1x48xf32>
    %c0_7 = arith.constant 0 : index
    %c0_8 = arith.constant 0 : index
    %4 = vector.load %arg4[%c0_7, %c0_8] : memref<1x48xf32, #tpu.memory_space<vmem>>, vector<1x48xf32>
    %cst = arith.constant dense<0.000000e+00> : vector<48xf32>
    %5 = vector.multi_reduction <add>, %0, %cst [0] : vector<8x48xf32> to vector<48xf32>
    %6 = vector.shape_cast %5 : vector<48xf32> to vector<1x48xf32>
    %cst_9 = arith.constant 8.000000e+00 : f32
    %7 = vector.broadcast %cst_9 : f32 to vector<1x48xf32>
    %8 = arith.divf %6, %7 : vector<1x48xf32>
    %9 = vector.broadcast %8 : vector<1x48xf32> to vector<8x48xf32>
    %10 = arith.subf %0, %9 : vector<8x48xf32>
    %11 = arith.mulf %10, %10 : vector<8x48xf32>
    %cst_10 = arith.constant dense<0.000000e+00> : vector<48xf32>
    %12 = vector.multi_reduction <add>, %11, %cst_10 [0] : vector<8x48xf32> to vector<48xf32>
    %13 = vector.shape_cast %12 : vector<48xf32> to vector<1x48xf32>
    %cst_11 = arith.constant 8.000000e+00 : f32
    %14 = vector.broadcast %cst_11 : f32 to vector<1x48xf32>
    %15 = arith.divf %13, %14 : vector<1x48xf32>
    %cst_12 = arith.constant 9.99999974E-6 : f32
    %16 = vector.broadcast %cst_12 : f32 to vector<1x48xf32>
    %17 = arith.addf %15, %16 : vector<1x48xf32>
    %18 = math.rsqrt %17 : vector<1x48xf32>
    %19 = vector.broadcast %18 : vector<1x48xf32> to vector<8x48xf32>
    %20 = arith.mulf %10, %19 : vector<8x48xf32>
    %21 = vector.broadcast %3 : vector<1x48xf32> to vector<8x48xf32>
    %22 = arith.mulf %20, %21 : vector<8x48xf32>
    %23 = vector.broadcast %4 : vector<1x48xf32> to vector<8x48xf32>
    %24 = arith.addf %22, %23 : vector<8x48xf32>
    %c0_13 = arith.constant 0 : index
    %c0_14 = arith.constant 0 : index
    %25 = vector.load %arg5[%c0_13, %c0_14] : memref<1x2xf32, #tpu.memory_space<vmem>>, vector<1x2xf32>
    %c0_15 = arith.constant 0 : index
    %c0_16 = arith.constant 0 : index
    %26 = vector.load %arg6[%c0_15, %c0_16] : memref<1x2xf32, #tpu.memory_space<vmem>>, vector<1x2xf32>
    %cst_17 = arith.constant dense<0.000000e+00> : vector<2xf32>
    %27 = vector.multi_reduction <add>, %1, %cst_17 [0] : vector<8x2xf32> to vector<2xf32>
    %28 = vector.shape_cast %27 : vector<2xf32> to vector<1x2xf32>
    %cst_18 = arith.constant 8.000000e+00 : f32
    %29 = vector.broadcast %cst_18 : f32 to vector<1x2xf32>
    %30 = arith.divf %28, %29 : vector<1x2xf32>
    %31 = vector.broadcast %30 : vector<1x2xf32> to vector<8x2xf32>
    %32 = arith.subf %1, %31 : vector<8x2xf32>
    %33 = arith.mulf %32, %32 : vector<8x2xf32>
    %cst_19 = arith.constant dense<0.000000e+00> : vector<2xf32>
    %34 = vector.multi_reduction <add>, %33, %cst_19 [0] : vector<8x2xf32> to vector<2xf32>
    %35 = vector.shape_cast %34 : vector<2xf32> to vector<1x2xf32>
    %cst_20 = arith.constant 8.000000e+00 : f32
    %36 = vector.broadcast %cst_20 : f32 to vector<1x2xf32>
    %37 = arith.divf %35, %36 : vector<1x2xf32>
    %cst_21 = arith.constant 9.99999974E-6 : f32
    %38 = vector.broadcast %cst_21 : f32 to vector<1x2xf32>
    %39 = arith.addf %37, %38 : vector<1x2xf32>
    %40 = math.rsqrt %39 : vector<1x2xf32>
    %41 = vector.broadcast %40 : vector<1x2xf32> to vector<8x2xf32>
    %42 = arith.mulf %32, %41 : vector<8x2xf32>
    %43 = vector.broadcast %25 : vector<1x2xf32> to vector<8x2xf32>
    %44 = arith.mulf %42, %43 : vector<8x2xf32>
    %45 = vector.broadcast %26 : vector<1x2xf32> to vector<8x2xf32>
    %46 = arith.addf %44, %45 : vector<8x2xf32>
    %47 = arith.truncf %24 : vector<8x48xf32> to vector<8x48xbf16>
    %c0_22 = arith.constant 0 : index
    %c0_23 = arith.constant 0 : index
    %48 = vector.load %arg7[%c0_22, %c0_23] : memref<48x256xbf16, #tpu.memory_space<vmem>>, vector<48x256xbf16>
    %cst_24 = arith.constant dense<0.000000e+00> : vector<8x256xf32>
    %49 = tpu.matmul %47, %48, %cst_24 {dimension_numbers = #tpu.dot_dimension_numbers<[1], [0], [0], [1], [0, 0, 1, 1], [], []>} : vector<8x48xbf16>, vector<48x256xbf16>, vector<8x256xf32> -> vector<8x256xf32>
    %c0_25 = arith.constant 0 : index
    %c0_26 = arith.constant 0 : index
    %50 = vector.load %arg9[%c0_25, %c0_26] : memref<1x256xf32, #tpu.memory_space<vmem>>, vector<1x256xf32>
    %51 = vector.broadcast %50 : vector<1x256xf32> to vector<8x256xf32>
    %52 = arith.addf %49, %51 : vector<8x256xf32>
    %53 = vector.extract_strided_slice %46 {offsets = [0, 0], sizes = [8, 1], strides = [1, 1]} : vector<8x2xf32> to vector<8x1xf32>
    %c0_27 = arith.constant 0 : index
    %c0_28 = arith.constant 0 : index
    %54 = vector.load %arg8[%c0_27, %c0_28] : memref<2x256xf32, #tpu.memory_space<vmem>>, vector<1x256xf32>
    %55 = vector.broadcast %53 : vector<8x1xf32> to vector<8x256xf32>
    %56 = vector.broadcast %54 : vector<1x256xf32> to vector<8x256xf32>
    %57 = arith.mulf %55, %56 : vector<8x256xf32>
    %58 = arith.addf %52, %57 : vector<8x256xf32>
    %59 = vector.extract_strided_slice %46 {offsets = [0, 1], sizes = [8, 1], strides = [1, 1]} : vector<8x2xf32> to vector<8x1xf32>
    %c1 = arith.constant 1 : index
    %c0_29 = arith.constant 0 : index
    %60 = vector.load %arg8[%c1, %c0_29] : memref<2x256xf32, #tpu.memory_space<vmem>>, vector<1x256xf32>
    %61 = vector.broadcast %59 : vector<8x1xf32> to vector<8x256xf32>
    %62 = vector.broadcast %60 : vector<1x256xf32> to vector<8x256xf32>
    %63 = arith.mulf %61, %62 : vector<8x256xf32>
    %64 = arith.addf %58, %63 : vector<8x256xf32>
    %cst_30 = arith.constant 0.000000e+00 : f32
    %65 = vector.broadcast %cst_30 : f32 to vector<8x256xf32>
    %66 = arith.cmpf ogt, %64, %65 : vector<8x256xf32>
    %cst_31 = arith.constant 0.00999999977 : f32
    %67 = vector.broadcast %cst_31 : f32 to vector<8x256xf32>
    %68 = arith.mulf %67, %64 : vector<8x256xf32>
    %69 = arith.select %66, %64, %68 : vector<8x256xi1>, vector<8x256xf32>
    %70 = arith.truncf %69 : vector<8x256xf32> to vector<8x256xbf16>
    %c0_32 = arith.constant 0 : index
    %c0_33 = arith.constant 0 : index
    %71 = vector.load %arg10[%c0_32, %c0_33] : memref<256x256xbf16, #tpu.memory_space<vmem>>, vector<256x256xbf16>
    %cst_34 = arith.constant dense<0.000000e+00> : vector<8x256xf32>
    %72 = tpu.matmul %70, %71, %cst_34 {dimension_numbers = #tpu.dot_dimension_numbers<[1], [0], [0], [1], [0, 0, 1, 1], [], []>} : vector<8x256xbf16>, vector<256x256xbf16>, vector<8x256xf32> -> vector<8x256xf32>
    %c0_35 = arith.constant 0 : index
    %c0_36 = arith.constant 0 : index
    %73 = vector.load %arg12[%c0_35, %c0_36] : memref<1x256xf32, #tpu.memory_space<vmem>>, vector<1x256xf32>
    %74 = vector.broadcast %73 : vector<1x256xf32> to vector<8x256xf32>
    %75 = arith.addf %72, %74 : vector<8x256xf32>
    %76 = vector.extract_strided_slice %2 {offsets = [0, 0], sizes = [8, 1], strides = [1, 1]} : vector<8x2xf32> to vector<8x1xf32>
    %c0_37 = arith.constant 0 : index
    %c0_38 = arith.constant 0 : index
    %77 = vector.load %arg11[%c0_37, %c0_38] : memref<2x256xf32, #tpu.memory_space<vmem>>, vector<1x256xf32>
    %78 = vector.broadcast %76 : vector<8x1xf32> to vector<8x256xf32>
    %79 = vector.broadcast %77 : vector<1x256xf32> to vector<8x256xf32>
    %80 = arith.mulf %78, %79 : vector<8x256xf32>
    %81 = arith.addf %75, %80 : vector<8x256xf32>
    %82 = vector.extract_strided_slice %2 {offsets = [0, 1], sizes = [8, 1], strides = [1, 1]} : vector<8x2xf32> to vector<8x1xf32>
    %c1_39 = arith.constant 1 : index
    %c0_40 = arith.constant 0 : index
    %83 = vector.load %arg11[%c1_39, %c0_40] : memref<2x256xf32, #tpu.memory_space<vmem>>, vector<1x256xf32>
    %84 = vector.broadcast %82 : vector<8x1xf32> to vector<8x256xf32>
    %85 = vector.broadcast %83 : vector<1x256xf32> to vector<8x256xf32>
    %86 = arith.mulf %84, %85 : vector<8x256xf32>
    %87 = arith.addf %81, %86 : vector<8x256xf32>
    %cst_41 = arith.constant 0.000000e+00 : f32
    %88 = vector.broadcast %cst_41 : f32 to vector<8x256xf32>
    %89 = arith.cmpf ogt, %87, %88 : vector<8x256xf32>
    %cst_42 = arith.constant 0.00999999977 : f32
    %90 = vector.broadcast %cst_42 : f32 to vector<8x256xf32>
    %91 = arith.mulf %90, %87 : vector<8x256xf32>
    %92 = arith.select %89, %87, %91 : vector<8x256xi1>, vector<8x256xf32>
    %93 = arith.truncf %92 : vector<8x256xf32> to vector<8x256xbf16>
    %c0_43 = arith.constant 0 : index
    %c0_44 = arith.constant 0 : index
    %94 = vector.load %arg13[%c0_43, %c0_44] : memref<256x128xbf16, #tpu.memory_space<vmem>>, vector<256x128xbf16>
    %cst_45 = arith.constant dense<0.000000e+00> : vector<8x128xf32>
    %95 = tpu.matmul %93, %94, %cst_45 {dimension_numbers = #tpu.dot_dimension_numbers<[1], [0], [0], [1], [0, 0, 1, 1], [], []>} : vector<8x256xbf16>, vector<256x128xbf16>, vector<8x128xf32> -> vector<8x128xf32>
    %c0_46 = arith.constant 0 : index
    %c0_47 = arith.constant 0 : index
    %96 = vector.load %arg14[%c0_46, %c0_47] : memref<1x128xf32, #tpu.memory_space<vmem>>, vector<1x128xf32>
    %97 = vector.broadcast %96 : vector<1x128xf32> to vector<8x128xf32>
    %98 = arith.addf %95, %97 : vector<8x128xf32>
    %cst_48 = arith.constant 0.000000e+00 : f32
    %99 = vector.broadcast %cst_48 : f32 to vector<8x128xf32>
    %100 = arith.cmpf ogt, %98, %99 : vector<8x128xf32>
    %cst_49 = arith.constant 0.00999999977 : f32
    %101 = vector.broadcast %cst_49 : f32 to vector<8x128xf32>
    %102 = arith.mulf %101, %98 : vector<8x128xf32>
    %103 = arith.select %100, %98, %102 : vector<8x128xi1>, vector<8x128xf32>
    %104 = arith.truncf %103 : vector<8x128xf32> to vector<8x128xbf16>
    %c0_50 = arith.constant 0 : index
    %c0_51 = arith.constant 0 : index
    %105 = vector.load %arg15[%c0_50, %c0_51] : memref<128x128xbf16, #tpu.memory_space<vmem>>, vector<128x128xbf16>
    %cst_52 = arith.constant dense<0.000000e+00> : vector<8x128xf32>
    %106 = tpu.matmul %104, %105, %cst_52 {dimension_numbers = #tpu.dot_dimension_numbers<[1], [0], [0], [1], [0, 0, 1, 1], [], []>} : vector<8x128xbf16>, vector<128x128xbf16>, vector<8x128xf32> -> vector<8x128xf32>
    %c0_53 = arith.constant 0 : index
    %c0_54 = arith.constant 0 : index
    %107 = vector.load %arg16[%c0_53, %c0_54] : memref<1x128xf32, #tpu.memory_space<vmem>>, vector<1x128xf32>
    %108 = vector.broadcast %107 : vector<1x128xf32> to vector<8x128xf32>
    %109 = arith.addf %106, %108 : vector<8x128xf32>
    %cst_55 = arith.constant dense<0xFF800000> : vector<8xf32>
    %110 = vector.multi_reduction <maximumf>, %109, %cst_55 [1] : vector<8x128xf32> to vector<8xf32>
    %111 = vector.shape_cast %110 : vector<8xf32> to vector<8x1xf32>
    %112 = vector.broadcast %111 : vector<8x1xf32> to vector<8x128xf32>
    %113 = arith.subf %109, %112 : vector<8x128xf32>
    %114 = math.exp %113 : vector<8x128xf32>
    %cst_56 = arith.constant dense<0.000000e+00> : vector<8xf32>
    %115 = vector.multi_reduction <add>, %114, %cst_56 [1] : vector<8x128xf32> to vector<8xf32>
    %116 = vector.shape_cast %115 : vector<8xf32> to vector<8x1xf32>
    %117 = tpu.reciprocal %116 {approx = true} : vector<8x1xf32> -> vector<8x1xf32>
    %118 = vector.broadcast %117 : vector<8x1xf32> to vector<8x128xf32>
    %119 = arith.mulf %114, %118 : vector<8x128xf32>
    %c0_57 = arith.constant 0 : index
    %c0_58 = arith.constant 0 : index
    %120 = vector.load %arg17[%c0_57, %c0_58] : memref<8x128xf32, #tpu.memory_space<vmem>>, vector<8x128xf32>
    tpu.vector_store %arg17[%c0_57, %c0_58], %119 {strides = array<i32>} : memref<8x128xf32, #tpu.memory_space<vmem>>, vector<8x128xf32>,
    return
  }
}

</mosaic_0001>

<bundles_post_ra>
// kernel: tpu_custom_call.1
= control target key start
LH: loop header
LB: loop body
LE: loop exit
PB: predicated region body
PF: predicated region fallthrough
CT: control target
= control target key end

     0   :  { %s1591_s0 = inlined_call_operand.vmem [shape: f32[8,48], index: 0, kind: input, shape index: {}]   ;;  %s1592_s1 = inlined_call_operand.vmem [shape: f32[8,2], index: 1, kind: input, shape index: {}]   ;;  %s1593_s2 = inlined_call_operand.vmem [shape: f32[8,2], index: 2, kind: input, shape index: {}]   ;;  %s1594_s3 = inlined_call_operand.hbm [shape: f32[1,48], index: 3, kind: input, shape index: {}]   ;;  %s1595_s4 = inlined_call_operand.vmem [shape: f32[1,48], index: 4, kind: input, shape index: {}]   ;;  %s1596_s5 = inlined_call_operand.vmem [shape: f32[1,2], index: 5, kind: input, shape index: {}]   ;;  %s1597_s6 = inlined_call_operand.vmem [shape: f32[1,2], index: 6, kind: input, shape index: {}]   ;;  %s1598_s7 = inlined_call_operand.hbm [shape: bf16[48,256], index: 7, kind: input, shape index: {}]   ;;  %s1599_s8 = inlined_call_operand.vmem [shape: f32[2,256], index: 8, kind: input, shape index: {}]   ;;  %s1600_s9 = inlined_call_operand.vmem [shape: f32[1,256], index: 9, kind: input, shape index: {}]   ;;  %s1601_s10 = inlined_call_operand.hbm [shape: bf16[256,256], index: 10, kind: input, shape index: {}]   ;;  %s1602_s11 = inlined_call_operand.vmem [shape: f32[2,256], index: 11, kind: input, shape index: {}]   ;;  %s1603_s12 = inlined_call_operand.vmem [shape: f32[1,256], index: 12, kind: input, shape index: {}]   ;;  %s1604_s13 = inlined_call_operand.hbm [shape: bf16[256,128], index: 13, kind: input, shape index: {}]   ;;  %s1605_s14 = inlined_call_operand.vmem [shape: f32[1,128], index: 14, kind: input, shape index: {}]   ;;  %s1606_s15 = inlined_call_operand.hbm [shape: bf16[128,128], index: 15, kind: input, shape index: {}]   ;;  %s1607_s16 = inlined_call_operand.vmem [shape: f32[1,128], index: 16, kind: input, shape index: {}]   ;;  %s1608_s17 = inlined_call_operand.hbm [shape: f32[8,128], index: 17, kind: output, shape index: {}]  }
   0x1   :  { %1609 = sst [smem:[#allocation16_spill]] %s1591_s0 }
   0x2   :  { %1610 = sst [smem:[#allocation17_spill]] %s1592_s1 }
   0x3   :  { %1611 = sst [smem:[#allocation18_spill]] %s1608_s17 }
   0x4   :  { %22 = vsyncpa [#allocation3], 0 }
   0x5   :  { %23 = vsyncpa [#allocation6], 0 }
   0x6   :  { %24 = vsyncpa [#allocation9], 0  ;;  %s53_s26 = sshll.u32 %s1598_s7, 4  ;;  %s54_s26 = int_to_ptr.hbm [resolvable:$true] %s53_s26 }
   0x7   :  { %25 = vsyncpa [#allocation4], 0  ;;  %s1395_s27 = smov [#allocation5]   ;;  %s87_s30 = sshll.u32 %s1604_s13, 4  ;;  %s88_s30 = int_to_ptr.hbm [resolvable:$true] %s87_s30 }
   0x8   :  { %s55_s28 = sshll.u32 %s1395_s27, 4  ;;  %s1396_s18 = smov 128   ;;  %s56_s28 = int_to_ptr.vmem [resolvable:$true] %s55_s28 }
   0x9   :  { %s1397_s19 = smov 8   ;;  %s1398_s1 = smov [#allocation8]  }
   0xa   :  { %61 = dma.hbm_to_vmem [thread:$0]  %s54_s26, 768, %s56_s28, [#allocation6], %s1396_s18, %s1396_s18, %s1397_s19  }
   0xb   :  { %s89_s20 = sshll.u32 %s1398_s1, 4  ;;  %s1399_s21 = smov 64   ;;  %s90_s20 = int_to_ptr.vmem [resolvable:$true] %s89_s20 }
   0xc   :  { %s1400_s22 = smov 4   ;;  %s37_s24 = sshll.u32 %s1594_s3, 4  ;;  %s38_s24 = int_to_ptr.hbm [resolvable:$true] %s37_s24 }
   0xd   :  { %95 = dma.hbm_to_vmem [thread:$0]  %s88_s30, 2048, %s90_s20, [#allocation9], %s1399_s21, %s1399_s21, %s1400_s22  }
   0xe   :  { %s1401_s25 = smov [#allocation2]   ;;  %s70_s0 = sshll.u32 %s1601_s10, 4  ;;  %s71_s0 = int_to_ptr.hbm [resolvable:$true] %s70_s0 }
   0xf   :  { %s39_s27 = sshll.u32 %s1401_s25, 4  ;;  %s1402_s26 = smov [#allocation7]   ;;  %s40_s27 = int_to_ptr.vmem [resolvable:$true] %s39_s27 }
  0x10   :  { %42 = dma.hbm_to_vmem [thread:$0]  %s38_s24, 16, %s40_s27, [#allocation3]  }
  0x11   :  { %s72_s28 = sshll.u32 %s1402_s26, 4  ;;  %s102_s30 = sshll.u32 %s1606_s15, 4  ;;  %s73_s28 = int_to_ptr.vmem [resolvable:$true] %s72_s28  ;;  %s103_s30 = int_to_ptr.hbm [resolvable:$true] %s102_s30 }
  0x12   :  { %78 = dma.hbm_to_vmem [thread:$0]  %s71_s0, 4096, %s73_s28, [#allocation6], %s1396_s18, %s1396_s18, %s1397_s19  }
  0x13   :  { %s1403_s3 = smov [#allocation10]  }
  0x14   :  { %s104_s20 = sshll.u32 %s1403_s3, 4  ;;  %s105_s20 = int_to_ptr.vmem [resolvable:$true] %s104_s20 }
  0x15   :  { %110 = dma.hbm_to_vmem [thread:$0]  %s103_s30, 1024, %s105_s20, [#allocation9], %s1399_s21, %s1399_s21, %s1400_s22  }
  0x16   :  { %1387 = dma.done.wait [#allocation3], 16  }
  0x17   :  { %1388 = vsyncadd [#allocation3], 4294967280 }
  0x18   :  { %1389 = dma.done.wait [#allocation6], 4864  }
  0x19   :  { %1390 = vsyncadd [#allocation6], 4294962432 }
  0x1a   :  { %1391 = dma.done.wait [#allocation9], 3072  }
  0x1b   :  { %1392 = vsyncadd [#allocation9], 4294964224  ;;  %v1404_v0 = vmov 8.0   ;;  %vm139_vm0 = vcmask 392192   ;;  %v914_v2 = vld [vmem:[#allocation5 + $0x20] sm:$0xf] }
  0x1c   :  { %1233 = vrcp.f32 %v1404_v0  ;;  %v1153_v3 = vld [vmem:[#allocation5 + $0x24] sm:$0xf0]  ;;  %v906_v4 = vld [vmem:[#allocation5 + $0x10] sm:$0xf]  ;;  %v1151_v6 = vld [vmem:[#allocation5 + $0x14] sm:$0xf0] }
  0x1d   :  { %v915_v5 = vor.u32 %v1153_v3, %v914_v2  ;;  %vm187_vm1 = vcmask 15360   ;;  %v898_v7 = vld [vmem:[#allocation5] sm:$0xf]  ;;  %v1149_v8 = vld [vmem:[#allocation5 + $0x4] sm:$0xf0]  ;;  %s1612_s17 = sld [smem:[#allocation16_spill]]  ;;  %v907_v11 = vor.u32 %v1151_v6, %v906_v4 }
  0x1e   :  { %s1613_s21 = sld [smem:[#allocation17_spill]]  ;;  %v899_v20 = vor.u32 %v1149_v8, %v898_v7  ;;  %v1152_v51 = vld [vmem:[#allocation5 + $0x24] sm:$0xf]  ;;  %v916_v52 = vld [vmem:[#allocation5 + $0x28] sm:$0xf0]  ;;  %v1405_v54 = vmov 0  }
  0x1f   :  { %277 = vmatpush.bf16.msra.mxu1 %v915_v5  ;;  %v919_v53 = vor.u32 %v1152_v51, %v916_v52  ;;  %1223 = vset.pattern.permute.xlu0 %v1405_v54  ;;  %v1150_v56 = vld [vmem:[#allocation5 + $0x14] sm:$0xf]  ;;  %v908_v57 = vld [vmem:[#allocation5 + $0x18] sm:$0xf0]  ;;  %v1148_v62 = vld [vmem:[#allocation5 + $0x4] sm:$0xf] }
  0x20   :  { %1225 = vset.pattern.permute.xlu1 %v1405_v54  ;;  %v911_v60 = vor.u32 %v1150_v56, %v908_v57  ;;  %v900_v63 = vld [vmem:[#allocation5 + $0x8] sm:$0xf0]  ;;  %v981_v8 = vld [vmem:[#allocation7 + $0x70] sm:$0xf]  ;;  %s1618_s19 = sld [smem:[#allocation18_spill]] }
  0x21   :  { %v949_v54 = vld [vmem:[#allocation7 + $0x30] sm:$0xf] }
  0x22   :  { %v1234_v1 = vpop.eup %1233  ;;  %v1045_v56 = vld [vmem:[#allocation7 + $0xf0] sm:$0xf] }
  0x23   :  { %v134_v9 = vld [vmem:[%s1612_s17] sm:$0xff]  ;;  %v148_v10 = vmul.f32 8.0, %v1234_v1  ;;  %278 = vmatpush.bf16.msra.mxu1 %v907_v11  ;;  %vm152_vm2 = vweird.f32 %v1234_v1 }
  0x24   :  { %v140_v12 = vsel %vm139_vm0, %v134_v9, 0.0  ;;  %v135_v13 = vld [vmem:[%s1613_s21] sm:$0xff] }
  0x25   :  { %v141_v14 = vrot.slane %v140_v12, 4  ;;  %v149_v15 = vsub.f32 1.0, %v148_v10  ;;  %v188_v16 = vsel %vm187_vm1, %v135_v13, 0.0  ;;  %v1168_v10 = vld [vmem:[#allocation7 + $0x74] sm:$0xf] }
  0x26   :  { %v189_v17 = vrot.slane %v188_v16, 4  ;;  %s884_s21 = sshll.u32 %s1618_s19, 4  ;;  %s885_s21 = int_to_ptr.hbm [resolvable:$true] %s884_s21 }
  0x27   :  { %v142_v18 = vadd.f32 %v141_v14, %v140_v12  ;;  %v150_v19 = vmul.f32 %v1234_v1, %v149_v15  ;;  %279 = vmatpush.bf16.msra.mxu1 %v899_v20  ;;  %v973_v14 = vld [vmem:[#allocation7 + $0x60] sm:$0xf] }
  0x28   :  { %v190_v21 = vadd.f32 %v189_v17, %v188_v16  ;;  %v1167_v17 = vld [vmem:[#allocation7 + $0x64] sm:$0xf0] }
  0x29   :  { %v143_v22 = vrot.slane %v142_v18, 2  ;;  %v151_v23 = vadd.f32 %v1234_v1, %v150_v19  ;;  %v974_v20 = vor.u32 %v1167_v17, %v973_v14  ;;  %v933_v14 = vld [vmem:[#allocation7 + $0x10] sm:$0xf] }
  0x2a   :  { %v191_v24 = vrot.slane %v190_v21, 2  ;;  %v1029_v17 = vld [vmem:[#allocation7 + $0xd0] sm:$0xf] }
  0x2b   :  { %v144_v25 = vadd.f32 %v143_v22, %v142_v18  ;;  %v153_v28 = vsel %vm152_vm2, %v1234_v1, %v151_v23  ;;  %290 = vmatpush.bf16.msrb.mxu1 %v919_v53  ;;  %v903_v1 = vor.u32 %v1148_v62, %v900_v63  ;;  %v1166_v18 = vld [vmem:[#allocation7 + $0x64] sm:$0xf]  ;;  %v1184_v63 = vld [vmem:[#allocation7 + $0xf4] sm:$0xf] }
  0x2c   :  { %v192_v26 = vadd.f32 %v191_v24, %v190_v21  ;;  %v975_v21 = vld [vmem:[#allocation7 + $0x68] sm:$0xf0]  ;;  %v1180_v22 = vld [vmem:[#allocation7 + $0xd4] sm:$0xf] }
  0x2d   :  { %v145_v27 = vrot.slane %v144_v25, 1  ;;  %v978_v24 = vor.u32 %v1166_v18, %v975_v21  ;;  %v1181_v18 = vld [vmem:[#allocation7 + $0xd4] sm:$0xf0]  ;;  %v935_v21 = vld [vmem:[#allocation7 + $0x18] sm:$0xf0] }
  0x2e   :  { %v193_v29 = vrot.slane %v192_v26, 1 }
  0x2f   :  { %v146_v30 = vadd.f32 %v145_v27, %v144_v25  ;;  %291 = vmatpush.bf16.msrb.mxu1 %v911_v60  ;;  %v965_v25 = vld [vmem:[#allocation7 + $0x50] sm:$0xf]  ;;  %v951_v60 = vld [vmem:[#allocation7 + $0x38] sm:$0xf0] }
  0x30   :  { %v194_v31 = vadd.f32 %v193_v29, %v192_v26  ;;  %v1165_v26 = vld [vmem:[#allocation7 + $0x54] sm:$0xf0]  ;;  %v1164_v29 = vld [vmem:[#allocation7 + $0x54] sm:$0xf] }
  0x31   :  { %v154_v32 = vmul.f32 %v153_v28, %v146_v30  ;;  %v967_v30 = vld [vmem:[#allocation7 + $0x58] sm:$0xf0] }
  0x32   :  { %v195_v33 = vmul.f32 %v194_v31, %v153_v28  ;;  %v1227_v31 = vld [vmem:[#allocation2] ss:$0 sm:$0xff] }
  0x33   :  { %v1521_v34 = vsub.f32 %v134_v9, %v154_v32  ;;  %292 = vmatpush.bf16.msrb.mxu1 %v903_v1  ;;  %v1169_v9 = vld [vmem:[#allocation7 + $0x74] sm:$0xf0] }
  0x34   :  { %v1523_v35 = vsub.f32 %v135_v13, %v195_v33  ;;  %v982_v12 = vor.u32 %v1169_v9, %v981_v8  ;;  %v983_v13 = vld [vmem:[#allocation7 + $0x78] sm:$0xf0]  ;;  %v943_v8 = vld [vmem:[#allocation7 + $0x28] sm:$0xf0] }
  0x35   :  { %v156_v36 = vmul.f32 %v1521_v34, %v1521_v34  ;;  %v986_v16 = vor.u32 %v1168_v10, %v983_v13 }
  0x36   :  { %v197_v37 = vmul.f32 %v1523_v35, %v1523_v35  ;;  %534 = vmatpush.bf16.msra.mxu2 %v982_v12  ;;  %v1039_v12 = vld [vmem:[#allocation7 + $0xe8] sm:$0xf0] }
  0x37   :  { %v157_v38 = vsel %vm139_vm0, %v156_v36, 0.0  ;;  %560 = vmatpush.bf16.msra.mxu0 %v986_v16  ;;  %v1229_v36 = vld [vmem:[%s1596_s5] ss:$0 sm:$0xff] }
  0x38   :  { %v158_v39 = vrot.slane %v157_v38, 4  ;;  %v198_v40 = vsel %vm187_vm1, %v197_v37, 0.0  ;;  %v966_v37 = vor.u32 %v1165_v26, %v965_v25  ;;  %v925_v26 = vld [vmem:[#allocation7] sm:$0xf] }
  0x39   :  { %v199_v41 = vrot.slane %v198_v40, 4 }
  0x3a   :  { %v159_v42 = vadd.f32 %v158_v39, %v157_v38  ;;  %535 = vmatpush.bf16.msra.mxu2 %v974_v20  ;;  %v1228_v39 = vld [vmem:[%s1595_s4] ss:$0 sm:$0xff]  ;;  %v1156_v20 = vld [vmem:[#allocation7 + $0x14] sm:$0xf] }
  0x3b   :  { %v200_v43 = vadd.f32 %v199_v41, %v198_v40  ;;  %561 = vmatpush.bf16.msra.mxu0 %v978_v24  ;;  %v970_v41 = vor.u32 %v1164_v29, %v967_v30  ;;  %v1031_v24 = vld [vmem:[#allocation7 + $0xd8] sm:$0xf0]  ;;  %v1179_v30 = vld [vmem:[#allocation7 + $0xc4] sm:$0xf0] }
  0x3c   :  { %v160_v44 = vrot.slane %v159_v42, 2  ;;  %v1034_v25 = vor.u32 %v1180_v22, %v1031_v24 }
  0x3d   :  { %v201_v45 = vrot.slane %v200_v43, 2 }
  0x3e   :  { %v161_v46 = vadd.f32 %v160_v44, %v159_v42  ;;  %v957_v42 = vld [vmem:[#allocation7 + $0x40] sm:$0xf]  ;;  %536 = vmatpush.bf16.msra.mxu2 %v966_v37  ;;  %v1178_v37 = vld [vmem:[#allocation7 + $0xc4] sm:$0xf] }
  0x3f   :  { %v202_v47 = vadd.f32 %v201_v45, %v200_v43  ;;  %v1163_v43 = vld [vmem:[#allocation7 + $0x44] sm:$0xf0]  ;;  %v1230_v45 = vld [vmem:[%s1597_s6] ss:$0 sm:$0xff]  ;;  %562 = vmatpush.bf16.msra.mxu0 %v970_v41  ;;  %v1177_v41 = vld [vmem:[#allocation7 + $0xb4] sm:$0xf0] }
  0x40   :  { %v162_v48 = vrot.slane %v161_v46, 1 }
  0x41   :  { %v203_v49 = vrot.slane %v202_v47, 1 }
  0x42   :  { %v163_v50 = vadd.f32 %v162_v48, %v161_v46  ;;  %v1162_v46 = vld [vmem:[#allocation7 + $0x44] sm:$0xf] }
  0x43   :  { %v204_v55 = vadd.f32 %v203_v49, %v202_v47  ;;  %v959_v47 = vld [vmem:[#allocation7 + $0x48] sm:$0xf0]  ;;  %v958_v49 = vor.u32 %v1163_v43, %v957_v42  ;;  %v1176_v42 = vld [vmem:[#allocation7 + $0xb4] sm:$0xf] }
  0x44   :  { %v164_v58 = vmul.f32 %v163_v50, %v153_v28  ;;  %v962_v51 = vor.u32 %v1162_v46, %v959_v47  ;;  %v1005_v46 = vld [vmem:[#allocation7 + $0xa0] sm:$0xf]  ;;  %v1175_v47 = vld [vmem:[#allocation7 + $0xa4] sm:$0xf0] }
  0x45   :  { %v205_v59 = vmul.f32 %v204_v55, %v153_v28  ;;  %537 = vmatpush.bf16.msra.mxu2 %v958_v49  ;;  %v1161_v55 = vld [vmem:[#allocation7 + $0x34] sm:$0xf0]  ;;  %v1021_v28 = vld [vmem:[#allocation7 + $0xc0] sm:$0xf]  ;;  %v1007_v49 = vld [vmem:[#allocation7 + $0xa8] sm:$0xf0] }
  0x46   :  { %v165_v61 = vadd.f32 1e-05, %v164_v58  ;;  %563 = vmatpush.bf16.msra.mxu0 %v962_v51  ;;  %v950_v57 = vor.u32 %v1161_v55, %v949_v54  ;;  %v1185_v58 = vld [vmem:[#allocation7 + $0xf4] sm:$0xf0]  ;;  %v997_v51 = vld [vmem:[#allocation7 + $0x90] sm:$0xf] }
  0x47   :  { %v206_v0 = vadd.f32 1e-05, %v205_v59  ;;  %v1160_v59 = vld [vmem:[#allocation7 + $0x34] sm:$0xf]  ;;  %v999_v55 = vld [vmem:[#allocation7 + $0x98] sm:$0xf0] }
  0x48   :  { %1235 = vrsqrt.f32 %v165_v61  ;;  %vm172_vm3 = vweird.f32 %v165_v61  ;;  %v954_v62 = vor.u32 %v1160_v59, %v951_v60  ;;  %v1171_v59 = vld [vmem:[#allocation7 + $0x84] sm:$0xf0]  ;;  %v1170_v60 = vld [vmem:[#allocation7 + $0x84] sm:$0xf] }
  0x49   :  { %1237 = vrsqrt.f32 %v206_v0  ;;  %vm213_vm5 = vweird.f32 %v206_v0  ;;  %538 = vmatpush.bf16.msra.mxu2 %v950_v57 }
  0x4a   :  { %564 = vmatpush.bf16.msra.mxu0 %v954_v62  ;;  %v991_v62 = vld [vmem:[#allocation7 + $0x88] sm:$0xf0] }
  0x4e   :  { %v1236_v2 = vpop.eup %1235 }
  0x4f   :  { %v1238_v3 = vpop.eup %1237  ;;  %v167_v4 = vmul.f32 %v1236_v2, %v165_v61  ;;  %vm173_vm4 = vweird.f32 %v1236_v2  ;;  %v1046_v61 = vor.u32 %v1185_v58, %v1045_v56  ;;  %v989_v58 = vld [vmem:[#allocation7 + $0x80] sm:$0xf] }
  0x50   :  { %v208_v5 = vmul.f32 %v1238_v3, %v206_v0  ;;  %vm214_vm6 = vweird.f32 %v1238_v3  ;;  %vm1532_vm7 = vmor %vm172_vm3, %vm173_vm4  ;;  %v1047_v0 = vld [vmem:[#allocation7 + $0xf8] sm:$0xf0] }
  0x51   :  { %v168_v6 = vmul.f32 %v1236_v2, %v167_v4  ;;  %vm1538_vm8 = vmor %vm213_vm5, %vm214_vm6  ;;  %v1050_v1 = vor.u32 %v1184_v63, %v1047_v0  ;;  %547 = vmatpush.bf16.msra.mxu3 %v1046_v61  ;;  %v1037_v4 = vld [vmem:[#allocation7 + $0xe0] sm:$0xf]  ;;  %v990_v61 = vor.u32 %v1171_v59, %v989_v58  ;;  %v298_v63 = vld [vmem:[%s1599_s8] ss:$2 sm:$0x3]  ;;  %v994_v0 = vor.u32 %v1170_v60, %v991_v62 }
  0x52   :  { %v209_v7 = vmul.f32 %v1238_v3, %v208_v5  ;;  %v1206_v59 = vld [vmem:[#allocation10 + $0x20] sm:$0xff] }
  0x53   :  { %v169_v11 = vmul.f32 0.5, %v168_v6  ;;  %v1183_v6 = vld [vmem:[#allocation7 + $0xe4] sm:$0xf0] }
  0x54   :  { %v210_v15 = vmul.f32 0.5, %v209_v7  ;;  %v1158_v7 = vld [vmem:[#allocation7 + $0x24] sm:$0xf]  ;;  %v1038_v9 = vor.u32 %v1183_v6, %v1037_v4  ;;  %v136_v4 = vld [vmem:[%s1593_s2] sm:$0xff] }
  0x55   :  { %v170_v19 = vsub.f32 1.5, %v169_v11  ;;  %v946_v10 = vor.u32 %v1158_v7, %v943_v8  ;;  %v1182_v11 = vld [vmem:[#allocation7 + $0xe4] sm:$0xf]  ;;  %589 = vperm.xlu1 %1225, %v136_v4  }
  0x56   :  { %v211_v23 = vsub.f32 1.5, %v210_v15  ;;  %v1042_v13 = vor.u32 %v1182_v11, %v1039_v12  ;;  %548 = vmatpush.bf16.msra.mxu3 %v1038_v9  ;;  %v1157_v15 = vld [vmem:[#allocation7 + $0x14] sm:$0xf0] }
  0x57   :  { %v171_v27 = vmul.f32 %v1236_v2, %v170_v19  ;;  %565 = vmatpush.bf16.msra.mxu0 %v946_v10  ;;  %v934_v16 = vor.u32 %v1157_v15, %v933_v14  ;;  %v1030_v19 = vor.u32 %v1181_v18, %v1029_v17 }
  0x58   :  { %v212_v32 = vmul.f32 %v1238_v3, %v211_v23  ;;  %v938_v23 = vor.u32 %v1156_v20, %v935_v21 }
  0x59   :  { %v175_v33 = vsel %vm1532_vm7, %v1236_v2, %v171_v27  ;;  %v941_v2 = vld [vmem:[#allocation7 + $0x20] sm:$0xf]  ;;  %v1155_v27 = vld [vmem:[#allocation7 + $0x4] sm:$0xf0] }
  0x5a   :  { %v176_v38 = vmul.f32 %v175_v33, %v1521_v34  ;;  %v216_v40 = vsel %vm1538_vm8, %v1238_v3, %v212_v32  ;;  %v1159_v3 = vld [vmem:[#allocation7 + $0x24] sm:$0xf0]  ;;  %549 = vmatpush.bf16.msra.mxu3 %v1030_v19  ;;  %v926_v29 = vor.u32 %v1155_v27, %v925_v26  ;;  %v927_v32 = vld [vmem:[#allocation7 + $0x8] sm:$0xf0]  ;;  %v1022_v33 = vor.u32 %v1179_v30, %v1021_v28 }
  0x5b   :  { %v217_v44 = vmul.f32 %v216_v40, %v1523_v35  ;;  %v1406_v35 = vmov 1   ;;  %v942_v5 = vor.u32 %v1159_v3, %v941_v2  ;;  %566 = vmatpush.bf16.msra.mxu0 %v938_v23  ;;  %v1013_v40 = vld [vmem:[#allocation7 + $0xb0] sm:$0xf]  ;;  %v305_v3 = vperm.slane %v298_v63, 0 }
  0x5c   :  { %v180_v34 = vmul.f32 %v1227_v31, %v176_v38  ;;  %v1154_v31 = vld [vmem:[#allocation7 + $0x4] sm:$0xf]  ;;  %v1023_v38 = vld [vmem:[#allocation7 + $0xc8] sm:$0xf0]  ;;  %v1014_v43 = vor.u32 %v1177_v41, %v1013_v40  ;;  %v306_v19 = vperm.slane %v298_v63, 1  ;;  %v1196_v41 = vld [vmem:[#allocation8 + $0x50] sm:$0xff] }
  0x5d   :  { %v221_v48 = vmul.f32 %v1229_v36, %v217_v44  ;;  %539 = vmatpush.bf16.msra.mxu2 %v942_v5  ;;  %v930_v36 = vor.u32 %v1154_v31, %v927_v32  ;;  %v1015_v44 = vld [vmem:[#allocation7 + $0xb8] sm:$0xf0]  ;;  %v922_v2 = vld [vmem:[%s1599_s8 + $0x1] ss:$2 sm:$0x3]  ;;  %1226 = vset.pattern.permute.xlu1 %v1406_v35  ;;  %v1190_v40 = vld [vmem:[#allocation8 + $0x20] sm:$0xff] }
  0x5e   :  { %v184_v50 = vadd.f32 %v1228_v39, %v180_v34  ;;  %v1026_v39 = vor.u32 %v1178_v37, %v1023_v38  ;;  %550 = vmatpush.bf16.msra.mxu3 %v1022_v33  ;;  %v1174_v34 = vld [vmem:[#allocation7 + $0xa4] sm:$0xf]  ;;  %v1201_v5 = vld [vmem:[#allocation8 + $0x78] sm:$0xff]  ;;  %v320_v7 = vperm.slane %v922_v2, 0  ;;  %604 = vperm.xlu1 %1226, %v136_v4   ;;  %v321_v21 = vperm.slane %v922_v2, 1  ;;  %v1200_v31 = vld [vmem:[#allocation8 + $0x70] sm:$0xff] }
  0x5f   :  { %v225_v52 = vadd.f32 %v1230_v45, %v221_v48  ;;  %567 = vmatpush.bf16.msra.mxu0 %v930_v36  ;;  %v1018_v45 = vor.u32 %v1176_v42, %v1015_v44  ;;  %v1006_v48 = vor.u32 %v1175_v47, %v1005_v46  ;;  %v1193_v32 = vld [vmem:[#allocation8 + $0x38] sm:$0xff]  ;;  %v1199_v33 = vld [vmem:[#allocation8 + $0x68] sm:$0xff]  ;;  %v1192_v36 = vld [vmem:[#allocation8 + $0x30] sm:$0xff] }
  0x60   :  { %v226_v53 = vpack.c.bf16 %v184_v50, %v184_v50  ;;  %v1010_v50 = vor.u32 %v1174_v34, %v1007_v49  ;;  %v1198_v37 = vld [vmem:[#allocation8 + $0x60] sm:$0xff]  ;;  %v1191_v38 = vld [vmem:[#allocation8 + $0x28] sm:$0xff]  ;;  %v1189_v42 = vld [vmem:[#allocation8 + $0x18] sm:$0xff] }
  0x61   :  { %301 = vperm.xlu0 %1223, %v225_v52   ;;  %540 = vmatpush.bf16.msra.mxu2 %v934_v16  ;;  %v1188_v44 = vld [vmem:[#allocation8 + $0x10] sm:$0xff]  ;;  %v1187_v46 = vld [vmem:[#allocation8 + $0x8] sm:$0xff]  ;;  %v1186_v47 = vld [vmem:[#allocation8] sm:$0xff] }
  0x62   :  { %920 = vmatmul.msk.bf16.vlgmr.msra.gmra.mxu1 %vm139_vm0, %v226_v53  ;;  %551 = vmatpush.bf16.msra.mxu3 %v1014_v43  ;;  %v1195_v43 = vld [vmem:[#allocation8 + $0x48] sm:$0xff] }
  0x63   :  { %573 = vmatpush.bf16.msra.mxu1 %v1050_v1  ;;  %v233_v1 = vld [vmem:[%s1600_s9] sm:$0x3] }
  0x64   :  { %v235_v6 = vperm.slane %v233_v1, 0  ;;  %v236_v20 = vperm.slane %v233_v1, 1 }
  0x65   :  { %541 = vmatpush.bf16.msra.mxu2 %v926_v29 }
  0x66   :  { %552 = vmatpush.bf16.msra.mxu3 %v1006_v48  ;;  %v1209_v48 = vld [vmem:[#allocation10 + $0x38] sm:$0xff] }
  0x67   :  { %574 = vmatpush.bf16.msra.mxu1 %v1042_v13  ;;  %854 = vmatpush.bf16.msrb.mxu0 %v1209_v48 }
  0x69   :  { %1224 = vset.pattern.permute.xlu0 %v1406_v35  ;;  %756 = vmatpush.bf16.msrb.mxu2 %v1193_v32 }
  0x6a   :  { %316 = vperm.xlu0 %1224, %v225_v52   ;;  %v1173_v52 = vld [vmem:[#allocation7 + $0x94] sm:$0xf0] }
  0x6b   :  { %575 = vmatpush.bf16.msra.mxu1 %v1034_v25  ;;  %v998_v54 = vor.u32 %v1173_v52, %v997_v51  ;;  %v368_v52 = vld [vmem:[%s1603_s12] sm:$0x3] }
  0x6c   :  { %v370_v2 = vperm.slane %v368_v52, 0 }
  0x6d   :  { %553 = vmatpush.bf16.msra.mxu3 %v998_v54  ;;  %757 = vmatpush.bf16.msrb.mxu2 %v1192_v36  ;;  %v586_v54 = vld [vmem:[%s1602_s11] ss:$2 sm:$0x3] }
  0x6e   :  { %v594_v58 = vperm.slane %v586_v54, 1 }
  0x6f   :  { %576 = vmatpush.bf16.msra.mxu1 %v1026_v39  ;;  %v1197_v39 = vld [vmem:[#allocation8 + $0x58] sm:$0xff] }
  0x71   :  { %554 = vmatpush.bf16.msra.mxu3 %v990_v61  ;;  %758 = vmatpush.bf16.msrb.mxu2 %v1191_v38 }
  0x72   :  { %921 = vmatmul.msk.bf16.vlgmr.msrb.gmra.mxu1 %vm139_vm0, %v226_v53  ;;  %v1172_v53 = vld [vmem:[#allocation7 + $0x94] sm:$0xf] }
  0x73   :  { %577 = vmatpush.bf16.msra.mxu1 %v1018_v45  ;;  %v1002_v57 = vor.u32 %v1172_v53, %v999_v55  ;;  %v1194_v45 = vld [vmem:[#allocation8 + $0x40] sm:$0xff]  ;;  %v1207_v55 = vld [vmem:[#allocation10 + $0x28] sm:$0xff] }
  0x75   :  { %769 = vmatpush.bf16.msrb.mxu3 %v1201_v5  ;;  %759 = vmatpush.bf16.msrb.mxu2 %v1190_v40  ;;  %v593_v5 = vperm.slane %v586_v54, 0 }
  0x77   :  { %578 = vmatpush.bf16.msra.mxu1 %v1010_v50  ;;  %v1208_v50 = vld [vmem:[#allocation10 + $0x30] sm:$0xff] }
  0x78   :  { %855 = vmatpush.bf16.msrb.mxu0 %v1208_v50 }
  0x79   :  { %770 = vmatpush.bf16.msrb.mxu3 %v1200_v31  ;;  %760 = vmatpush.bf16.msrb.mxu2 %v1189_v42 }
  0x7b   :  { %579 = vmatpush.bf16.msra.mxu1 %v1002_v57  ;;  %v371_v57 = vperm.slane %v368_v52, 1 }
  0x7c   :  { %856 = vmatpush.bf16.msrb.mxu0 %v1207_v55 }
  0x7d   :  { %771 = vmatpush.bf16.msrb.mxu3 %v1199_v33  ;;  %761 = vmatpush.bf16.msrb.mxu2 %v1188_v44 }
  0x7f   :  { %580 = vmatpush.bf16.msra.mxu1 %v994_v0 }
  0x80   :  { %857 = vmatpush.bf16.msrb.mxu0 %v1206_v59 }
  0x81   :  { %772 = vmatpush.bf16.msrb.mxu3 %v1198_v37  ;;  %762 = vmatpush.bf16.msrb.mxu2 %v1187_v46 }
  0x85   :  { %773 = vmatpush.bf16.msrb.mxu3 %v1197_v39  ;;  %763 = vmatpush.bf16.msrb.mxu2 %v1186_v47  ;;  %v1232_v39 = vld [vmem:[%s1607_s16] ss:$0 sm:$0xff] }
  0x89   :  { %774 = vmatpush.bf16.msrb.mxu3 %v1196_v41 }
  0x8d   :  { %775 = vmatpush.bf16.msrb.mxu3 %v1195_v43 }
  0x91   :  { %776 = vmatpush.bf16.msrb.mxu3 %v1194_v45 }
  0xc7   :  { %v590_v49 = vpop.permute.xlu1 %589 }
  0xc8   :  { %v598_v0 = vmul.f32 %v594_v58, %v590_v49 }
  0xd0   :  { %v605_v62 = vpop.permute.xlu1 %604 }
  0xd3   :  { %v302_v56 = vpop.permute.xlu0 %301 }
  0xd4   :  { %v309_v9 = vmul.f32 %v305_v3, %v302_v56  ;;  %v310_v23 = vmul.f32 %v306_v19, %v302_v56  ;;  %v1051_v56 = vld [vmem:[%s1602_s11 + $0x1] ss:$2 sm:$0x3] }
  0xd5   :  { %v609_v60 = vperm.slane %v1051_v56, 1 }
  0xd7   :  { %v613_v4 = vmul.f32 %v609_v60, %v605_v62 }
  0xdc   :  { %v317_v8 = vpop.permute.xlu0 %316 }
  0xdd   :  { %v324_v12 = vmul.f32 %v320_v7, %v317_v8  ;;  %v325_v25 = vmul.f32 %v321_v21, %v317_v8  ;;  %v608_v7 = vperm.slane %v1051_v56, 0 }
  0xdf   :  { %v281_v10 = vpop.f32.mrf.mxu1 }
  0xe0   :  { %v282_v11 = vadd.f32 %v281_v10, %v235_v6  ;;  %v597_v10 = vmul.f32 %v593_v5, %v590_v49 }
  0xe2   :  { %v311_v13 = vadd.f32 %v309_v9, %v282_v11 }
  0xe4   :  { %v326_v14 = vadd.f32 %v324_v12, %v311_v13  ;;  %v612_v12 = vmul.f32 %v608_v7, %v605_v62 }
  0xe6   :  { %vm328_vm9 = vcmp.gt.f32.partialorder %v326_v14, 0.0  ;;  %v330_v15 = vmul.f32 0.01, %v326_v14 }
  0xe7   :  { %v283_v16 = vpop.f32.mrf.mxu1 }
  0xe8   :  { %v332_v17 = vsel %vm328_vm9, %v326_v14, %v330_v15 }
  0xe9   :  { %v334_v18 = vpack.c.bf16 %v332_v17, %v332_v17 }
  0xeb   :  { %542 = vmatmul.bf16.vlgmr.msra.gmra.mxu2 %v334_v18  ;;  %568 = vmatmul.bf16.vlgmr.msra.gmra.mxu0 %v334_v18 }
  0xef   :  { %v294_v22 = vpop.f32.mrf.mxu1 }
  0xf0   :  { %v295_v24 = vadd.f32 %v294_v22, %v236_v20 }
  0xf2   :  { %v312_v26 = vadd.f32 %v310_v23, %v295_v24  ;;  %v1205_v24 = vld [vmem:[#allocation10 + $0x18] sm:$0xff] }
  0xf3   :  { %858 = vmatpush.bf16.msrb.mxu0 %v1205_v24 }
  0xf4   :  { %v327_v27 = vadd.f32 %v325_v25, %v312_v26  ;;  %v1204_v25 = vld [vmem:[#allocation10 + $0x10] sm:$0xff]  ;;  %v1203_v26 = vld [vmem:[#allocation10 + $0x8] sm:$0xff] }
  0xf6   :  { %vm329_vm10 = vcmp.gt.f32.partialorder %v327_v27, 0.0  ;;  %v331_v28 = vmul.f32 0.01, %v327_v27 }
  0xf7   :  { %v296_v35 = vpop.f32.mrf.mxu1  ;;  %859 = vmatpush.bf16.msrb.mxu0 %v1204_v25 }
  0xf8   :  { %v333_v29 = vsel %vm329_vm10, %v327_v27, %v331_v28  ;;  %v1202_v27 = vld [vmem:[#allocation10] sm:$0xff]  ;;  %v1231_v35 = vld [vmem:[%s1605_s14] ss:$0 sm:$0xff]  ;;  %s1407_s14 = smov [#allocation11]  }
  0xf9   :  { %v335_v30 = vpack.c.bf16 %v333_v29, %v333_v29  ;;  %s882_s15 = sshll.u32 %s1407_s14, 4  ;;  %s883_s15 = int_to_ptr.vmem [resolvable:$true] %s882_s15 }
  0xfb   :  { %555 = vmatmul.bf16.vlgmr.msra.gmra.mxu3 %v335_v30  ;;  %581 = vmatmul.bf16.vlgmr.msra.gmra.mxu1 %v335_v30 }
  0xfc   :  { %860 = vmatpush.bf16.msrb.mxu0 %v1203_v26 }
 0x100   :  { %861 = vmatpush.bf16.msrb.mxu0 %v1202_v27 }
 0x168   :  { %v569_v34 = vpop.f32.mrf.mxu0 }
 0x169   :  { %v570_v63 = vadd.f32 %v569_v34, %v371_v57 }
 0x16e   :  { %v543_v51 = vpop.f32.mrf.mxu2 }
 0x16f   :  { %v544_v8 = vadd.f32 %v543_v51, %v370_v2 }
 0x170   :  { %v571_v53 = vpop.f32.mrf.mxu0 }
 0x176   :  { %v545_v61 = vpop.f32.mrf.mxu2 }
 0x178   :  { %v582_v1 = vpop.f32.mrf.mxu1 }
 0x179   :  { %v583_v3 = vadd.f32 %v582_v1, %v570_v63 }
 0x17b   :  { %v600_v6 = vadd.f32 %v598_v0, %v583_v3 }
 0x17d   :  { %v615_v9 = vadd.f32 %v613_v4, %v600_v6 }
 0x17e   :  { %v556_v11 = vpop.f32.mrf.mxu3 }
 0x17f   :  { %v619_v13 = vmul.f32 0.01, %v615_v9  ;;  %v557_v14 = vadd.f32 %v556_v11, %v544_v8  ;;  %vm617_vm11 = vcmp.gt.f32.partialorder %v615_v9, 0.0 }
 0x180   :  { %v584_v15 = vpop.f32.mrf.mxu1 }
 0x181   :  { %v599_v16 = vadd.f32 %v597_v10, %v557_v14  ;;  %v621_v17 = vsel %vm617_vm11, %v615_v9, %v619_v13 }
 0x182   :  { %v623_v18 = vpack.c.bf16 %v621_v17, %v621_v17 }
 0x183   :  { %v614_v19 = vadd.f32 %v612_v12, %v599_v16 }
 0x184   :  { %777 = vmatmul.bf16.vlgmr.msrb.gmra.mxu3 %v623_v18 }
 0x185   :  { %vm616_vm12 = vcmp.gt.f32.partialorder %v614_v19, 0.0  ;;  %v618_v20 = vmul.f32 0.01, %v614_v19 }
 0x186   :  { %v558_v21 = vpop.f32.mrf.mxu3 }
 0x187   :  { %v620_v22 = vsel %vm616_vm12, %v614_v19, %v618_v20 }
 0x188   :  { %v622_v23 = vpack.c.bf16 %v620_v22, %v620_v22 }
 0x18a   :  { %764 = vmatmul.bf16.vlgmr.msrb.gmra.mxu2 %v622_v23 }
 0x207   :  { %v778_v28 = vpop.f32.mrf.mxu3 }
 0x20d   :  { %v765_v29 = vpop.f32.mrf.mxu2 }
 0x20e   :  { %v766_v30 = vadd.f32 %v1231_v35, %v765_v29 }
 0x20f   :  { %v780_v31 = vpop.f32.mrf.mxu3 }
 0x210   :  { %v779_v32 = vadd.f32 %v778_v28, %v766_v30 }
 0x212   :  { %v783_v33 = vmul.f32 0.01, %v779_v32  ;;  %vm782_vm13 = vcmp.gt.f32.partialorder %v779_v32, 0.0 }
 0x214   :  { %v784_v36 = vsel %vm782_vm13, %v779_v32, %v783_v33 }
 0x215   :  { %v767_v37 = vpop.f32.mrf.mxu2  ;;  %v785_v38 = vpack.c.bf16 %v784_v36, %v784_v36 }
 0x217   :  { %862 = vmatmul.bf16.vlgmr.msrb.gmra.mxu0 %v785_v38 }
 0x294   :  { %v863_v40 = vpop.f32.mrf.mxu0 }
 0x295   :  { %v864_v41 = vadd.f32 %v1232_v39, %v863_v40 }
 0x297   :  { %867 = vmax.xlane.f32.xlu2 %v864_v41 }
 0x29c   :  { %v865_v42 = vpop.f32.mrf.mxu0 }
 0x30a   :  { %v868_v43 = vpop.xlane.xlu2 %867 }
 0x30b   :  { %v869_v44 = vsub.f32 %v864_v41, %v868_v43 }
 0x30d   :  { %v870_v45 = vmul.f32 1.442695, %v869_v44 }
 0x30f   :  { %1239 = vpow2.f32 %v870_v45 }
 0x315   :  { %v1240_v46 = vpop.eup %1239 }
 0x316   :  { %872 = vadd.xlane.f32.xlu2 %v1240_v46 }
 0x389   :  { %v873_v47 = vpop.xlane.xlu2 %872 }
 0x38a   :  { %1241 = vrcp.f32 %v873_v47 }
 0x390   :  { %v1242_v34 = vpop.eup %1241 }
 0x391   :  { %v875_v48 = vmul.f32 %v1242_v34, %v1240_v46 }
 0x393   :  { %876 = vst [vmem:[#allocation11] sm:$0xff] %v875_v48 }
 0x394   :  { %887 = dma.vmem_to_hbm [thread:$0]  %s883_s15, 128, %s885_s21, [#allocation4]  }
 0x395   :  { %1393 = dma.done.wait [#allocation4], 128  }
 0x396   :  { %1394 = vsyncadd [#allocation4], 4294967168 }
 0x397   :  { %892 = vsyncpa [#allocation3], 1 }
 0x398   :  { %893 = vsyncpa [#allocation6], 1 }
 0x399   :  { %894 = vsyncpa [#allocation9], 1 }
 0x39a   :  { %895 = vsyncpa [#allocation4], 1 }

</bundles_post_ra>
